<compile_context>
chip_gen: v7x
topology: tpu7x:2x2x1
jax: 0.10.0
libtpu: 0.0.40
codegen_flags: <defaults>
</compile_context>

<pallas_src>
import functools

import jax
import jax.numpy as jnp
from jax import lax
from jax.experimental import pallas as pl
from jax.experimental.pallas import tpu as pltpu


def _residual_kernel(x_win_ref, w1_ref, b1_ref, w2_ref, b2_ref,
                     ml_ref, mr_ref, alpha_ref, o_ref, *, W, stacked):
    """One (image, row-tile) per grid step.

    x_win_ref : (1, 1, C, TEXT)  halo'd input window, TEXT = (TILE_H+2)*W,
                lane axis = flattened (row, col) of the window
    w1_ref    : (mid, C)         1x1 conv weight with BN1 scale folded in
    b1_ref    : (mid, 1)         folded BN1 bias (conv bias folded in)
    w2_ref    : (C, 9*mid)       [stacked] 3x3 weights, column = (ky*3+kx)*mid+m
                (3, 3, C, mid)   [fallback] tap-major weights (BN2 scale folded)
    b2_ref    : (C, 1)           folded BN2 bias
    ml_ref/mr_ref : (1, TILE_HW) horizontal masks (col>0 / col<W-1), {0,1} f32
    alpha_ref : (2,) SMEM        PReLU slopes [a1, a2]
    o_ref     : (1, C, TILE_HW)  output tile
    """
    r = pl.program_id(1)
    ntr = pl.num_programs(1)

    x_ext = x_win_ref[0, 0]                      # (C, TEXT) float32
    TEXT = x_ext.shape[-1]
    T = o_ref.shape[-1]                          # TILE_H * W
    C = o_ref.shape[1]
    mid = w1_ref.shape[0]

    # ---- layer 1: 1x1 conv (BN scale folded) + bias + PReLU ----------------
    y1 = jnp.dot(w1_ref[...], x_ext, preferred_element_type=jnp.float32)
    y1 = y1 + b1_ref[...]
    a1 = alpha_ref[0]
    y1 = jnp.where(y1 >= 0.0, y1, a1 * y1)       # (mid, TEXT)

    # Zero the halo rows that fall OUTSIDE the image: the 3x3 conv's zero
    # padding applies to the (post-activation) y1, so pad rows must be 0.
    j = lax.broadcasted_iota(jnp.int32, (1, TEXT), 1)
    top_pad = jnp.logical_and(j < W, r == 0)
    bot_pad = jnp.logical_and(j >= TEXT - W, r == ntr - 1)
    y1 = jnp.where(jnp.logical_or(top_pad, bot_pad), 0.0, y1)

    # ---- layer 2: 3x3 conv (pad=1) as shifted taps -------------------------
    # e_p[j] = y1[j+1], e_m[j] = y1[j-1] on the extended window; horizontal
    # row-wrap positions are zeroed by the precomputed masks.
    zcol = jnp.zeros((mid, 1), jnp.float32)
    e_p = jnp.concatenate([y1[:, 1:], zcol], axis=1)
    e_m = jnp.concatenate([zcol, y1[:, :TEXT - 1]], axis=1)
    ml = ml_ref[...]                              # col > 0
    mr = mr_ref[...]                              # col < W-1

    taps = []
    for ky in range(3):                           # dy = ky - 1
        off = ky * W
        taps.append(e_m[:, off:off + T] * ml)     # kx = 0  (dx = -1)
        taps.append(y1[:, off:off + T])           # kx = 1  (dx =  0)
        taps.append(e_p[:, off:off + T] * mr)     # kx = 2  (dx = +1)

    if stacked:
        # Single stacked-K matmul: contraction dim = 9*mid.
        z = jnp.concatenate(taps, axis=0)         # (9*mid, T)
        y2 = jnp.dot(w2_ref[...], z, preferred_element_type=jnp.float32)
    else:
        # Tiny-channel fallback: accumulate 9 pointwise matmuls.
        y2 = jnp.zeros((C, T), jnp.float32)
        k = 0
        for ky in range(3):
            for kx in range(3):
                y2 = y2 + jnp.dot(w2_ref[ky, kx], taps[k],
                                  preferred_element_type=jnp.float32)
                k += 1

    y2 = y2 + b2_ref[...]
    a2 = alpha_ref[1]
    y2 = jnp.where(y2 >= 0.0, y2, a2 * y2)        # (C, T)

    # ---- residual add -------------------------------------------------------
    x_tile = x_ext[:, W:W + T]                    # the non-halo part
    o_ref[0] = (y2 + x_tile).astype(o_ref.dtype)


def _pick_tile_h(H, W):
    """Smallest row-tile (>= min(8,H)) dividing H with lane-dense width."""
    lo = min(8, H)
    for th in range(lo, H + 1):
        if H % th == 0 and (th * W) % 128 == 0:
            return th
    return H  # full-extent block is always layout-legal


def residual_layer_forward(x, params, tile_h=None):
    """x: (N, C, H, W) float32 -> (N, C, H, W). Matches Residual_Layer.forward (eval)."""
    (w1, b1c, g1, be1, m1, v1, a1,
     w2, b2c, g2, be2, m2, v2, a2) = params
    N, C, H, W = x.shape
    mid = w1.shape[0]
    HW = H * W
    eps = 1e-5

    # Fold BN (eval) into the convs: scale -> weights, rest -> bias.
    s1 = g1 / jnp.sqrt(v1 + eps)
    s2 = g2 / jnp.sqrt(v2 + eps)
    bias1 = be1 + s1 * (b1c - m1)
    bias2 = be2 + s2 * (b2c - m2)

    w1p = (s1[:, None] * w1.reshape(mid, C)).astype(jnp.float32)     # (mid, C)
    b1v = bias1.reshape(mid, 1).astype(jnp.float32)
    b2v = bias2.reshape(C, 1).astype(jnp.float32)
    alphas = jnp.stack([jnp.asarray(a1, jnp.float32).reshape(()),
                        jnp.asarray(a2, jnp.float32).reshape(())])   # (2,) SMEM

    stacked = (mid % 8 == 0)
    if stacked:
        # column index = (ky*3 + kx)*mid + m
        w2_host = (s2[:, None]
                   * jnp.transpose(w2, (0, 2, 3, 1)).reshape(C, 9 * mid)
                   ).astype(jnp.float32)                             # (C, 9*mid)
        w2_spec = pl.BlockSpec((C, 9 * mid), lambda n, r: (0, 0))
    else:
        w2_host = (jnp.transpose(w2, (2, 3, 0, 1))
                   * s2[None, None, :, None]).astype(jnp.float32)    # (3,3,C,mid)
        w2_spec = pl.BlockSpec((3, 3, C, mid), lambda n, r: (0, 0, 0, 0))

    if tile_h is None:
        tile_h = _pick_tile_h(H, W)
    assert H % tile_h == 0, (H, tile_h)
    ntr = H // tile_h
    T = tile_h * W                    # lane-dense tile width
    TEXT = (tile_h + 2) * W           # with one halo row on each side

    # Overlapping (halo'd) row windows built host-side: window r covers rows
    # [r*tile_h - 1, (r+1)*tile_h + 1); out-of-image rows come from the pad.
    x_flat = x.reshape(N, C, HW).astype(jnp.float32)
    x_padded = jnp.pad(x_flat, ((0, 0), (0, 0), (W, W)))
    win_idx = (jnp.arange(ntr) * T)[:, None] + jnp.arange(TEXT)[None, :]
    x_win = jnp.transpose(x_padded[:, :, win_idx], (0, 2, 1, 3))     # (N,ntr,C,TEXT)

    # Horizontal boundary masks (same for every tile), precomputed on host.
    col = jnp.arange(T, dtype=jnp.int32) % W
    ml = (col > 0).astype(jnp.float32).reshape(1, T)
    mr = (col < W - 1).astype(jnp.float32).reshape(1, T)

    kernel = functools.partial(_residual_kernel, W=W, stacked=stacked)

    flops = 2 * N * HW * (C * mid + 9 * mid * C) + 12 * N * HW * (C + mid)
    bytes_accessed = 4 * (N * ntr * C * TEXT + N * C * HW
                          + w1p.size + w2_host.size + b1v.size + b2v.size
                          + 2 * T + 2)

    out = pl.pallas_call(
        kernel,
        out_shape=jax.ShapeDtypeStruct((N, C, HW), x.dtype),
        grid_spec=pltpu.PrefetchScalarGridSpec(
            num_scalar_prefetch=0,
            grid=(N, ntr),
            in_specs=[
                pl.BlockSpec((1, 1, C, TEXT), lambda n, r: (n, r, 0, 0)),
                pl.BlockSpec((mid, C), lambda n, r: (0, 0)),
                pl.BlockSpec((mid, 1), lambda n, r: (0, 0)),
                w2_spec,
                pl.BlockSpec((C, 1), lambda n, r: (0, 0)),
                pl.BlockSpec((1, T), lambda n, r: (0, 0)),
                pl.BlockSpec((1, T), lambda n, r: (0, 0)),
                pl.BlockSpec(memory_space=pltpu.MemorySpace.SMEM),
            ],
            out_specs=pl.BlockSpec((1, C, T), lambda n, r: (n, 0, r)),
        ),
        compiler_params=pltpu.CompilerParams(
            dimension_semantics=("parallel", "parallel"),
            vmem_limit_bytes=32 * 1024 * 1024,
        ),
        cost_estimate=pl.CostEstimate(
            flops=int(flops), transcendentals=0,
            bytes_accessed=int(bytes_accessed)),
    )(x_win, w1p, b1v, w2_host, b2v, ml, mr, alphas)

    return out.reshape(N, C, H, W)


def residual_layer_reference(x, params):
    """Pure-JAX reference (mirrors the PyTorch module in eval mode)."""
    (w1, b1c, g1, be1, m1, v1, a1,
     w2, b2c, g2, be2, m2, v2, a2) = params
    eps = 1e-5
    dn = ('NCHW', 'OIHW', 'NCHW')

    def bn(y, g, b, m, v):
        return ((y - m[None, :, None, None])
                / jnp.sqrt(v + eps)[None, :, None, None]
                * g[None, :, None, None] + b[None, :, None, None])

    def prelu(y, a):
        return jnp.where(y >= 0, y, a * y)

    y = lax.conv_general_dilated(x, w1, (1, 1), 'VALID', dimension_numbers=dn,
                                 precision=lax.Precision.HIGHEST)
    y = y + b1c[None, :, None, None]
    y = prelu(bn(y, g1, be1, m1, v1), a1)
    y = lax.conv_general_dilated(y, w2, (1, 1), ((1, 1), (1, 1)),
                                 dimension_numbers=dn,
                                 precision=lax.Precision.HIGHEST)
    y = y + b2c[None, :, None, None]
    y = prelu(bn(y, g2, be2, m2, v2), a2)
    return y + x


def _make_params(key, C):
    """Deterministic parameters (fan-in-scaled weights keep activations O(1))."""
    mid = C // 2
    ks = jax.random.split(key, 12)
    w1 = jax.random.normal(ks[0], (mid, C, 1, 1), jnp.float32) / jnp.sqrt(C * 1.0)
    b1c = 0.1 * jax.random.normal(ks[1], (mid,), jnp.float32)
    g1 = 1.0 + 0.1 * jax.random.normal(ks[2], (mid,), jnp.float32)
    be1 = 0.1 * jax.random.normal(ks[3], (mid,), jnp.float32)
    m1 = 0.1 * jax.random.normal(ks[4], (mid,), jnp.float32)
    v1 = 0.5 + jnp.abs(jax.random.normal(ks[5], (mid,), jnp.float32))
    a1 = jnp.float32(0.25)
    w2 = 0.5 * jax.random.normal(ks[6], (C, mid, 3, 3), jnp.float32) / jnp.sqrt(9.0 * mid)
    b2c = 0.1 * jax.random.normal(ks[7], (C,), jnp.float32)
    g2 = 1.0 + 0.1 * jax.random.normal(ks[8], (C,), jnp.float32)
    be2 = 0.1 * jax.random.normal(ks[9], (C,), jnp.float32)
    m2 = 0.1 * jax.random.normal(ks[10], (C,), jnp.float32)
    v2 = 0.5 + jnp.abs(jax.random.normal(ks[11], (C,), jnp.float32))
    a2 = jnp.float32(0.1)
    return (w1, b1c, g1, be1, m1, v1, a1,
            w2, b2c, g2, be2, m2, v2, a2)


if __name__ == "__main__":
    root = jax.random.PRNGKey(0)

    # Case 1: tiny channels (mid=2) -> per-tap fallback path, 2 row tiles
    #         (exercises both top-pad and bottom-pad boundary tiles).
    # Case 2: mid=8 -> stacked-K path, 4 row tiles (exercises interior tiles).
    cases = [(2, 4, 16, 16), (1, 16, 32, 16)]

    for i, shape in enumerate(cases):
        k_x, k_p = jax.random.split(jax.random.fold_in(root, i))
        N, C, H, W = shape
        x = jax.random.normal(k_x, shape, jnp.float32)
        params = _make_params(k_p, C)

        y = jax.block_until_ready(residual_layer_forward(x, params))
        y_ref = residual_layer_reference(x, params)

        assert y.shape == shape, (y.shape, shape)
        max_err = float(jnp.max(jnp.abs(y - y_ref)))
        # Tolerance covers single-pass bf16 MXU precision (default) vs f32 ref.
        assert jnp.allclose(y, y_ref, atol=2e-2, rtol=2e-2), (shape, max_err)

    print("KERNEL_OK")
</pallas_src>

<mosaic_0001>
module attributes {stable_mosaic.version = 11 : i64} {
  func.func @_residual_kernel(%arg0: i32, %arg1: i32, %arg2: memref<1x1x4x160xf32, #tpu.memory_space<vmem>>, %arg3: memref<2x4xf32, #tpu.memory_space<vmem>>, %arg4: memref<2x1xf32, #tpu.memory_space<vmem>>, %arg5: memref<3x3x4x2xf32, #tpu.memory_space<vmem>>, %arg6: memref<4x1xf32, #tpu.memory_space<vmem>>, %arg7: memref<1x128xf32, #tpu.memory_space<vmem>>, %arg8: memref<1x128xf32, #tpu.memory_space<vmem>>, %arg9: memref<2xf32, #tpu.memory_space<smem>>, %arg10: memref<1x4x128xf32, #tpu.memory_space<vmem>>) attributes {dimension_semantics = [#tpu.dimension_semantics<parallel>, #tpu.dimension_semantics<parallel>], iteration_bounds = array<i64: 2, 2>, scalar_prefetch = 0 : i64, scratch_operands = 0 : i64, tpu.core_type = #tpu.core_type<tc>, window_params = [{transform_indices = @transform_0, window_bounds = array<i64: 1, 1, 4, 160>}, {pipeline_mode = #tpu.pipeline_mode<synchronous>, transform_indices = @transform_1, window_bounds = array<i64: 2, 4>}, {pipeline_mode = #tpu.pipeline_mode<synchronous>, transform_indices = @transform_2, window_bounds = array<i64: 2, 1>}, {pipeline_mode = #tpu.pipeline_mode<synchronous>, transform_indices = @transform_3, window_bounds = array<i64: 3, 3, 4, 2>}, {pipeline_mode = #tpu.pipeline_mode<synchronous>, transform_indices = @transform_4, window_bounds = array<i64: 4, 1>}, {pipeline_mode = #tpu.pipeline_mode<synchronous>, transform_indices = @transform_5, window_bounds = array<i64: 1, 128>}, {pipeline_mode = #tpu.pipeline_mode<synchronous>, transform_indices = @transform_6, window_bounds = array<i64: 1, 128>}, {transform_indices = @transform_7, window_bounds = array<i64: 2>}, {transform_indices = @transform_8, window_bounds = array<i64: 1, 4, 128>}]} {
    %c0 = arith.constant 0 : index
    %c0_0 = arith.constant 0 : index
    %c0_1 = arith.constant 0 : index
    %c0_2 = arith.constant 0 : index
    %0 = vector.load %arg2[%c0, %c0_0, %c0_1, %c0_2] : memref<1x1x4x160xf32, #tpu.memory_space<vmem>>, vector<1x1x4x160xf32>
    %1 = vector.shape_cast %0 : vector<1x1x4x160xf32> to vector<4x160xf32>
    %c0_3 = arith.constant 0 : index
    %c0_4 = arith.constant 0 : index
    %2 = vector.load %arg3[%c0_3, %c0_4] : memref<2x4xf32, #tpu.memory_space<vmem>>, vector<2x4xf32>
    %cst = arith.constant dense<0.000000e+00> : vector<2x160xf32>
    %3 = tpu.matmul %2, %1, %cst {dimension_numbers = #tpu.dot_dimension_numbers<[1], [0], [0], [1], [0, 0, 1, 1], [], []>} : vector<2x4xf32>, vector<4x160xf32>, vector<2x160xf32> -> vector<2x160xf32>
    %c0_5 = arith.constant 0 : index
    %c0_6 = arith.constant 0 : index
    %4 = vector.load %arg4[%c0_5, %c0_6] : memref<2x1xf32, #tpu.memory_space<vmem>>, vector<2x1xf32>
    %5 = vector.broadcast %4 : vector<2x1xf32> to vector<2x160xf32>
    %6 = arith.addf %3, %5 : vector<2x160xf32>
    %c0_7 = arith.constant 0 : index
    %7 = memref.load %arg9[%c0_7] : memref<2xf32, #tpu.memory_space<smem>>
    %cst_8 = arith.constant 0.000000e+00 : f32
    %8 = vector.broadcast %cst_8 : f32 to vector<2x160xf32>
    %9 = arith.cmpf oge, %6, %8 : vector<2x160xf32>
    %10 = vector.broadcast %7 : f32 to vector<2x160xf32>
    %11 = arith.mulf %10, %6 : vector<2x160xf32>
    %12 = arith.select %9, %6, %11 : vector<2x160xi1>, vector<2x160xf32>
    %13 = tpu.iota {dimensions = array<i32: 1>} : vector<1x160xi32>
    %c16_i32 = arith.constant 16 : i32
    %14 = vector.broadcast %c16_i32 : i32 to vector<1x160xi32>
    %15 = arith.cmpi slt, %13, %14 : vector<1x160xi32>
    %c0_i32 = arith.constant 0 : i32
    %16 = arith.cmpi eq, %arg1, %c0_i32 : i32
    %17 = vector.broadcast %16 : i1 to vector<1x160xi1>
    %18 = arith.andi %15, %17 : vector<1x160xi1>
    %c144_i32 = arith.constant 144 : i32
    %19 = vector.broadcast %c144_i32 : i32 to vector<1x160xi32>
    %20 = arith.cmpi sge, %13, %19 : vector<1x160xi32>
    %c1_i32 = arith.constant 1 : i32
    %21 = arith.cmpi eq, %arg1, %c1_i32 : i32
    %22 = vector.broadcast %21 : i1 to vector<1x160xi1>
    %23 = arith.andi %20, %22 : vector<1x160xi1>
    %24 = arith.ori %18, %23 : vector<1x160xi1>
    %cst_9 = arith.constant 0.000000e+00 : f32
    %25 = vector.shape_cast %24 : vector<1x160xi1> to vector<1x160xi1>
    %26 = vector.broadcast %25 : vector<1x160xi1> to vector<2x160xi1>
    %27 = vector.broadcast %cst_9 : f32 to vector<2x160xf32>
    %28 = arith.select %26, %27, %12 : vector<2x160xi1>, vector<2x160xf32>
    %cst_10 = arith.constant 0.000000e+00 : f32
    %29 = vector.broadcast %cst_10 : f32 to vector<2x1xf32>
    %30 = vector.extract_strided_slice %28 {offsets = [0, 1], sizes = [2, 159], strides = [1, 1]} : vector<2x160xf32> to vector<2x159xf32>
    %31 = tpu.concatenate %30, %29 in 1 : vector<2x159xf32>, vector<2x1xf32> -> vector<2x160xf32>
    %32 = vector.extract_strided_slice %28 {offsets = [0, 0], sizes = [2, 159], strides = [1, 1]} : vector<2x160xf32> to vector<2x159xf32>
    %33 = tpu.concatenate %29, %32 in 1 : vector<2x1xf32>, vector<2x159xf32> -> vector<2x160xf32>
    %c0_11 = arith.constant 0 : index
    %c0_12 = arith.constant 0 : index
    %34 = vector.load %arg7[%c0_11, %c0_12] : memref<1x128xf32, #tpu.memory_space<vmem>>, vector<1x128xf32>
    %c0_13 = arith.constant 0 : index
    %c0_14 = arith.constant 0 : index
    %35 = vector.load %arg8[%c0_13, %c0_14] : memref<1x128xf32, #tpu.memory_space<vmem>>, vector<1x128xf32>
    %36 = vector.extract_strided_slice %33 {offsets = [0, 0], sizes = [2, 128], strides = [1, 1]} : vector<2x160xf32> to vector<2x128xf32>
    %37 = vector.broadcast %34 : vector<1x128xf32> to vector<2x128xf32>
    %38 = arith.mulf %36, %37 : vector<2x128xf32>
    %39 = vector.extract_strided_slice %28 {offsets = [0, 0], sizes = [2, 128], strides = [1, 1]} : vector<2x160xf32> to vector<2x128xf32>
    %40 = vector.extract_strided_slice %31 {offsets = [0, 0], sizes = [2, 128], strides = [1, 1]} : vector<2x160xf32> to vector<2x128xf32>
    %41 = vector.broadcast %35 : vector<1x128xf32> to vector<2x128xf32>
    %42 = arith.mulf %40, %41 : vector<2x128xf32>
    %43 = vector.extract_strided_slice %33 {offsets = [0, 16], sizes = [2, 128], strides = [1, 1]} : vector<2x160xf32> to vector<2x128xf32>
    %44 = vector.broadcast %34 : vector<1x128xf32> to vector<2x128xf32>
    %45 = arith.mulf %43, %44 : vector<2x128xf32>
    %46 = vector.extract_strided_slice %28 {offsets = [0, 16], sizes = [2, 128], strides = [1, 1]} : vector<2x160xf32> to vector<2x128xf32>
    %47 = vector.extract_strided_slice %31 {offsets = [0, 16], sizes = [2, 128], strides = [1, 1]} : vector<2x160xf32> to vector<2x128xf32>
    %48 = vector.broadcast %35 : vector<1x128xf32> to vector<2x128xf32>
    %49 = arith.mulf %47, %48 : vector<2x128xf32>
    %50 = vector.extract_strided_slice %33 {offsets = [0, 32], sizes = [2, 128], strides = [1, 1]} : vector<2x160xf32> to vector<2x128xf32>
    %51 = vector.broadcast %34 : vector<1x128xf32> to vector<2x128xf32>
    %52 = arith.mulf %50, %51 : vector<2x128xf32>
    %53 = vector.extract_strided_slice %28 {offsets = [0, 32], sizes = [2, 128], strides = [1, 1]} : vector<2x160xf32> to vector<2x128xf32>
    %54 = vector.extract_strided_slice %31 {offsets = [0, 32], sizes = [2, 128], strides = [1, 1]} : vector<2x160xf32> to vector<2x128xf32>
    %55 = vector.broadcast %35 : vector<1x128xf32> to vector<2x128xf32>
    %56 = arith.mulf %54, %55 : vector<2x128xf32>
    %cst_15 = arith.constant 0.000000e+00 : f32
    %57 = vector.broadcast %cst_15 : f32 to vector<4x128xf32>
    %c0_16 = arith.constant 0 : index
    %c0_17 = arith.constant 0 : index
    %c0_18 = arith.constant 0 : index
    %c0_19 = arith.constant 0 : index
    %58 = vector.load %arg5[%c0_16, %c0_17, %c0_18, %c0_19] : memref<3x3x4x2xf32, #tpu.memory_space<vmem>>, vector<1x1x4x2xf32>
    %59 = vector.shape_cast %58 : vector<1x1x4x2xf32> to vector<4x2xf32>
    %cst_20 = arith.constant dense<0.000000e+00> : vector<4x128xf32>
    %60 = tpu.matmul %59, %38, %cst_20 {dimension_numbers = #tpu.dot_dimension_numbers<[1], [0], [0], [1], [0, 0, 1, 1], [], []>} : vector<4x2xf32>, vector<2x128xf32>, vector<4x128xf32> -> vector<4x128xf32>
    %61 = arith.addf %57, %60 : vector<4x128xf32>
    %c0_21 = arith.constant 0 : index
    %c1 = arith.constant 1 : index
    %c0_22 = arith.constant 0 : index
    %c0_23 = arith.constant 0 : index
    %62 = vector.load %arg5[%c0_21, %c1, %c0_22, %c0_23] : memref<3x3x4x2xf32, #tpu.memory_space<vmem>>, vector<1x1x4x2xf32>
    %63 = vector.shape_cast %62 : vector<1x1x4x2xf32> to vector<4x2xf32>
    %cst_24 = arith.constant dense<0.000000e+00> : vector<4x128xf32>
    %64 = tpu.matmul %63, %39, %cst_24 {dimension_numbers = #tpu.dot_dimension_numbers<[1], [0], [0], [1], [0, 0, 1, 1], [], []>} : vector<4x2xf32>, vector<2x128xf32>, vector<4x128xf32> -> vector<4x128xf32>
    %65 = arith.addf %61, %64 : vector<4x128xf32>
    %c0_25 = arith.constant 0 : index
    %c2 = arith.constant 2 : index
    %c0_26 = arith.constant 0 : index
    %c0_27 = arith.constant 0 : index
    %66 = vector.load %arg5[%c0_25, %c2, %c0_26, %c0_27] : memref<3x3x4x2xf32, #tpu.memory_space<vmem>>, vector<1x1x4x2xf32>
    %67 = vector.shape_cast %66 : vector<1x1x4x2xf32> to vector<4x2xf32>
    %cst_28 = arith.constant dense<0.000000e+00> : vector<4x128xf32>
    %68 = tpu.matmul %67, %42, %cst_28 {dimension_numbers = #tpu.dot_dimension_numbers<[1], [0], [0], [1], [0, 0, 1, 1], [], []>} : vector<4x2xf32>, vector<2x128xf32>, vector<4x128xf32> -> vector<4x128xf32>
    %69 = arith.addf %65, %68 : vector<4x128xf32>
    %c1_29 = arith.constant 1 : index
    %c0_30 = arith.constant 0 : index
    %c0_31 = arith.constant 0 : index
    %c0_32 = arith.constant 0 : index
    %70 = vector.load %arg5[%c1_29, %c0_30, %c0_31, %c0_32] : memref<3x3x4x2xf32, #tpu.memory_space<vmem>>, vector<1x1x4x2xf32>
    %71 = vector.shape_cast %70 : vector<1x1x4x2xf32> to vector<4x2xf32>
    %cst_33 = arith.constant dense<0.000000e+00> : vector<4x128xf32>
    %72 = tpu.matmul %71, %45, %cst_33 {dimension_numbers = #tpu.dot_dimension_numbers<[1], [0], [0], [1], [0, 0, 1, 1], [], []>} : vector<4x2xf32>, vector<2x128xf32>, vector<4x128xf32> -> vector<4x128xf32>
    %73 = arith.addf %69, %72 : vector<4x128xf32>
    %c1_34 = arith.constant 1 : index
    %c1_35 = arith.constant 1 : index
    %c0_36 = arith.constant 0 : index
    %c0_37 = arith.constant 0 : index
    %74 = vector.load %arg5[%c1_34, %c1_35, %c0_36, %c0_37] : memref<3x3x4x2xf32, #tpu.memory_space<vmem>>, vector<1x1x4x2xf32>
    %75 = vector.shape_cast %74 : vector<1x1x4x2xf32> to vector<4x2xf32>
    %cst_38 = arith.constant dense<0.000000e+00> : vector<4x128xf32>
    %76 = tpu.matmul %75, %46, %cst_38 {dimension_numbers = #tpu.dot_dimension_numbers<[1], [0], [0], [1], [0, 0, 1, 1], [], []>} : vector<4x2xf32>, vector<2x128xf32>, vector<4x128xf32> -> vector<4x128xf32>
    %77 = arith.addf %73, %76 : vector<4x128xf32>
    %c1_39 = arith.constant 1 : index
    %c2_40 = arith.constant 2 : index
    %c0_41 = arith.constant 0 : index
    %c0_42 = arith.constant 0 : index
    %78 = vector.load %arg5[%c1_39, %c2_40, %c0_41, %c0_42] : memref<3x3x4x2xf32, #tpu.memory_space<vmem>>, vector<1x1x4x2xf32>
    %79 = vector.shape_cast %78 : vector<1x1x4x2xf32> to vector<4x2xf32>
    %cst_43 = arith.constant dense<0.000000e+00> : vector<4x128xf32>
    %80 = tpu.matmul %79, %49, %cst_43 {dimension_numbers = #tpu.dot_dimension_numbers<[1], [0], [0], [1], [0, 0, 1, 1], [], []>} : vector<4x2xf32>, vector<2x128xf32>, vector<4x128xf32> -> vector<4x128xf32>
    %81 = arith.addf %77, %80 : vector<4x128xf32>
    %c2_44 = arith.constant 2 : index
    %c0_45 = arith.constant 0 : index
    %c0_46 = arith.constant 0 : index
    %c0_47 = arith.constant 0 : index
    %82 = vector.load %arg5[%c2_44, %c0_45, %c0_46, %c0_47] : memref<3x3x4x2xf32, #tpu.memory_space<vmem>>, vector<1x1x4x2xf32>
    %83 = vector.shape_cast %82 : vector<1x1x4x2xf32> to vector<4x2xf32>
    %cst_48 = arith.constant dense<0.000000e+00> : vector<4x128xf32>
    %84 = tpu.matmul %83, %52, %cst_48 {dimension_numbers = #tpu.dot_dimension_numbers<[1], [0], [0], [1], [0, 0, 1, 1], [], []>} : vector<4x2xf32>, vector<2x128xf32>, vector<4x128xf32> -> vector<4x128xf32>
    %85 = arith.addf %81, %84 : vector<4x128xf32>
    %c2_49 = arith.constant 2 : index
    %c1_50 = arith.constant 1 : index
    %c0_51 = arith.constant 0 : index
    %c0_52 = arith.constant 0 : index
    %86 = vector.load %arg5[%c2_49, %c1_50, %c0_51, %c0_52] : memref<3x3x4x2xf32, #tpu.memory_space<vmem>>, vector<1x1x4x2xf32>
    %87 = vector.shape_cast %86 : vector<1x1x4x2xf32> to vector<4x2xf32>
    %cst_53 = arith.constant dense<0.000000e+00> : vector<4x128xf32>
    %88 = tpu.matmul %87, %53, %cst_53 {dimension_numbers = #tpu.dot_dimension_numbers<[1], [0], [0], [1], [0, 0, 1, 1], [], []>} : vector<4x2xf32>, vector<2x128xf32>, vector<4x128xf32> -> vector<4x128xf32>
    %89 = arith.addf %85, %88 : vector<4x128xf32>
    %c2_54 = arith.constant 2 : index
    %c2_55 = arith.constant 2 : index
    %c0_56 = arith.constant 0 : index
    %c0_57 = arith.constant 0 : index
    %90 = vector.load %arg5[%c2_54, %c2_55, %c0_56, %c0_57] : memref<3x3x4x2xf32, #tpu.memory_space<vmem>>, vector<1x1x4x2xf32>
    %91 = vector.shape_cast %90 : vector<1x1x4x2xf32> to vector<4x2xf32>
    %cst_58 = arith.constant dense<0.000000e+00> : vector<4x128xf32>
    %92 = tpu.matmul %91, %56, %cst_58 {dimension_numbers = #tpu.dot_dimension_numbers<[1], [0], [0], [1], [0, 0, 1, 1], [], []>} : vector<4x2xf32>, vector<2x128xf32>, vector<4x128xf32> -> vector<4x128xf32>
    %93 = arith.addf %89, %92 : vector<4x128xf32>
    %c0_59 = arith.constant 0 : index
    %c0_60 = arith.constant 0 : index
    %94 = vector.load %arg6[%c0_59, %c0_60] : memref<4x1xf32, #tpu.memory_space<vmem>>, vector<4x1xf32>
    %95 = vector.broadcast %94 : vector<4x1xf32> to vector<4x128xf32>
    %96 = arith.addf %93, %95 : vector<4x128xf32>
    %c1_61 = arith.constant 1 : index
    %97 = memref.load %arg9[%c1_61] : memref<2xf32, #tpu.memory_space<smem>>
    %cst_62 = arith.constant 0.000000e+00 : f32
    %98 = vector.broadcast %cst_62 : f32 to vector<4x128xf32>
    %99 = arith.cmpf oge, %96, %98 : vector<4x128xf32>
    %100 = vector.broadcast %97 : f32 to vector<4x128xf32>
    %101 = arith.mulf %100, %96 : vector<4x128xf32>
    %102 = arith.select %99, %96, %101 : vector<4x128xi1>, vector<4x128xf32>
    %103 = vector.extract_strided_slice %1 {offsets = [0, 16], sizes = [4, 128], strides = [1, 1]} : vector<4x160xf32> to vector<4x128xf32>
    %104 = arith.addf %102, %103 : vector<4x128xf32>
    %c0_63 = arith.constant 0 : index
    %c0_64 = arith.constant 0 : index
    %c0_65 = arith.constant 0 : index
    %105 = vector.load %arg10[%c0_63, %c0_64, %c0_65] : memref<1x4x128xf32, #tpu.memory_space<vmem>>, vector<1x4x128xf32>
    %106 = vector.shape_cast %105 : vector<1x4x128xf32> to vector<4x128xf32>
    %107 = vector.shape_cast %104 : vector<4x128xf32> to vector<1x4x128xf32>
    tpu.vector_store %arg10[%c0_63, %c0_64, %c0_65], %107 {strides = array<i32>} : memref<1x4x128xf32, #tpu.memory_space<vmem>>, vector<1x4x128xf32>,
    return
  }
  func.func @transform_0(%arg0: i32, %arg1: i32) -> (i32, i32, i32, i32) {
    %c0_i32 = arith.constant 0 : i32
    %c0_i32_0 = arith.constant 0 : i32
    %c0_i32_1 = arith.constant 0 : i32
    return %arg0, %arg1, %c0_i32, %c0_i32_0 : i32, i32, i32, i32
  }
  func.func @transform_1(%arg0: i32, %arg1: i32) -> (i32, i32) {
    %c0_i32 = arith.constant 0 : i32
    %c0_i32_0 = arith.constant 0 : i32
    %c0_i32_1 = arith.constant 0 : i32
    return %c0_i32, %c0_i32_0 : i32, i32
  }
  func.func @transform_2(%arg0: i32, %arg1: i32) -> (i32, i32) {
    %c0_i32 = arith.constant 0 : i32
    %c0_i32_0 = arith.constant 0 : i32
    %c0_i32_1 = arith.constant 0 : i32
    return %c0_i32, %c0_i32_0 : i32, i32
  }
  func.func @transform_3(%arg0: i32, %arg1: i32) -> (i32, i32, i32, i32) {
    %c0_i32 = arith.constant 0 : i32
    %c0_i32_0 = arith.constant 0 : i32
    %c0_i32_1 = arith.constant 0 : i32
    %c0_i32_2 = arith.constant 0 : i32
    %c0_i32_3 = arith.constant 0 : i32
    return %c0_i32, %c0_i32_0, %c0_i32_1, %c0_i32_2 : i32, i32, i32, i32
  }
  func.func @transform_4(%arg0: i32, %arg1: i32) -> (i32, i32) {
    %c0_i32 = arith.constant 0 : i32
    %c0_i32_0 = arith.constant 0 : i32
    %c0_i32_1 = arith.constant 0 : i32
    return %c0_i32, %c0_i32_0 : i32, i32
  }
  func.func @transform_5(%arg0: i32, %arg1: i32) -> (i32, i32) {
    %c0_i32 = arith.constant 0 : i32
    %c0_i32_0 = arith.constant 0 : i32
    %c0_i32_1 = arith.constant 0 : i32
    return %c0_i32, %c0_i32_0 : i32, i32
  }
  func.func @transform_6(%arg0: i32, %arg1: i32) -> (i32, i32) {
    %c0_i32 = arith.constant 0 : i32
    %c0_i32_0 = arith.constant 0 : i32
    %c0_i32_1 = arith.constant 0 : i32
    return %c0_i32, %c0_i32_0 : i32, i32
  }
  func.func @transform_7(%arg0: i32, %arg1: i32) -> i32 {
    %c0_i32 = arith.constant 0 : i32
    %c0_i32_0 = arith.constant 0 : i32
    return %c0_i32 : i32
  }
  func.func @transform_8(%arg0: i32, %arg1: i32) -> (i32, i32, i32) {
    %c0_i32 = arith.constant 0 : i32
    %c0_i32_0 = arith.constant 0 : i32
    return %arg0, %c0_i32, %arg1 : i32, i32, i32
  }
}

</mosaic_0001>

<bundles_post_ra>
// kernel: tpu_custom_call.1
= control target key start
LH: loop header
LB: loop body
LE: loop exit
PB: predicated region body
PF: predicated region fallthrough
CT: control target
= control target key end

     0   :  { %s2058_s0 = inlined_call_operand.vmem [shape: f32[2,2,4,160], index: 0, kind: input, shape index: {}]   ;;  %s2059_s1 = inlined_call_operand.vmem [shape: f32[2,4], index: 1, kind: input, shape index: {}]   ;;  %s2060_s2 = inlined_call_operand.vmem [shape: f32[2,1], index: 2, kind: input, shape index: {}]   ;;  %s2061_s3 = inlined_call_operand.vmem [shape: f32[3,3,4,2], index: 3, kind: input, shape index: {}]   ;;  %s2062_s4 = inlined_call_operand.vmem [shape: f32[4,1], index: 4, kind: input, shape index: {}]   ;;  %s2063_s5 = inlined_call_operand.vmem [shape: f32[1,128], index: 5, kind: input, shape index: {}]   ;;  %s2064_s6 = inlined_call_operand.vmem [shape: f32[1,128], index: 6, kind: input, shape index: {}]   ;;  %s2065_s7 = inlined_call_operand.vmem [shape: f32[2], index: 7, kind: input, shape index: {}]   ;;  %s2066_s8 = inlined_call_operand.hbm [shape: f32[2,4,256], index: 8, kind: output, shape index: {}]  }
   0x1   :  { %2068 = sst [smem:[#allocation9_spill]] %s2065_s7 }
   0x2   :  { %13 = vsyncpa [#allocation4], 0 }
   0x3   :  { %14 = vsyncpa [#allocation3], 0 }
   0x4   :  { %16 = vsyncpa [#allocation3 + $0x1], 0  ;;  %s1776_s27 = smov 0   ;;  %s1778_s28 = smov 0  }
   0x5   :  { %s1780_s29 = smov 0   ;;  %s1782_s30 = smov 0  }
   0x6   :  { %s1784_s9 = smov 0   ;;  %s1786_s10 = smov 0  }
   0x7   :  { %s1788_s11 = smov 0   ;;  %s1790_s12 = smov 0  }
   0x8 LB: > { %s1400_s13 = sadd.s32 4294967295, %s1718_s12   ;;  %s1401_s14 = sadd.s32 4294967294, %s1718_s12   ;;  %s1718_s12 = sphi %s1790_s12, %s22_s12   ;;  %s1714_s11 = sphi %s1788_s11, %s2083_s11   ;;  %s1710_s10 = sphi %s1786_s10, %s2082_s10   ;;  %s1706_s9 = sphi %s1784_s9, %s2081_s9   ;;  %s1702_s30 = sphi %s1782_s30, %s2080_s30   ;;  %s1698_s29 = sphi %s1780_s29, %s2079_s29   ;;  %s1694_s28 = sphi %s1778_s28, %s2078_s28   ;;  %s1690_s27 = sphi %s1776_s27, %s2077_s27  }
   0x9   : > { %s31_s15 = sadd.s32 1, %s1710_s10  ;;  %s34_s16 = sadd.s32 1, %s1714_s11 }
   0xa   : > { %p32_p0 = scmp.ge.s32.totalorder %s31_s15, 2  ;;  %s218_s17 = sadd.s32 1, %s1698_s29 }
   0xb   : > { %p228_p1 = scmp.ne.s32.totalorder %s1698_s29, %s1694_s28  ;;  %p229_p2 = scmp.eq.s32.totalorder %s1400_s13, 3 }
   0xc   : > { %s2085_s15 = smov (%p32_p0, %s31_s15), 0  ;;  %s2087_s16 = smov (!%p32_p0, %s34_s16), %s1714_s11 }
   0xd   : > { %2069 = sst [smem:[#allocation8_spill]] %s2085_s15  ;;  %s214_s18 = ssub.s32 %s1710_s10, %s2085_s15 }
   0xe   : > { %p1828_p3 = por %p229_p2, %p228_p1  ;;  %p36_p4 = scmp.ge.s32.totalorder %s2087_s16, 2 }
   0xf   : > { %p234_p5 = scmp.ne.s32.totalorder %s1694_s28, %s1690_s27  ;;  %p235_p6 = scmp.eq.s32.totalorder %s1401_s14, 3 }
  0x10   : > { %p1402_p7 = scmp.ge.s32.totalorder %s1718_s12, 1  ;;  %s2089_s16 = smov (%p36_p4, %s2087_s16), 0 }
  0x11   : > { %p1837_p8 = por %p235_p6, %p234_p5  ;;  %p242_p9 = scmp.lt.s32.totalorder %s1718_s12, 5 }
  0x12   : > { %s213_s21 = ssub.s32 %s1714_s11, %s2089_s16  ;;  %p1848_p12 = scmp.eq.s32.totalorder %s1400_s13, 0 }
  0x13   : > { %s2071_s20 = scalar_select %p1837_p8, 1, 0 }
  0x14   : > { %s215_s22 = sor.u32 %s214_s18, %s213_s21  ;;  %p1844_p10 = pnand %p1402_p7, %p242_p9 }
  0x15   : > { %p216_p11 = scmp.eq.s32.totalorder %s215_s22, 0  ;;  %s2074_s7 = sld [smem:[#allocation9_spill]] }
  0x16   : > { %p1517_p13 = pneg %p1844_p10 }
  0x17   : > { %s1858_s15 = scalar_select %p216_p11, %s1698_s29, %s218_s17  }
  0x18   : > { %p1518_p0 = pnand %p1848_p12, %p1517_p13 }
  0x1a   : > { %p1607_p2 = pneg %p1518_p0 }
  0x1b   : > { %s273_s14 = sshll.u32 %s2074_s7, 4  ;;  %s274_s14 = int_to_ptr.vmem [resolvable:$true] %s273_s14 }
  0x1c   : > { %s1605_s18 = scalar_lea.vmem %s274_s14, 16  ;;  %p1613_p6 = scmp.lt.s32.totalorder %s274_s14, %s274_s14 }
  0x1d   : > { %p1606_p1 = scmp.ne.s32.totalorder %s274_s14, %s1605_s18  ;;  %p1614_p7 = scmp.lt.s32.totalorder %s1605_s18, %s1605_s18 }
  0x1f   : > { %p1608_p4 = pnand %p1607_p2, %p1606_p1  ;;  %p1615_p9 = por %p1614_p7, %p1613_p6 }
  0x21   : > { %p1609_p5 = pneg %p1608_p4 }
  0x23   : > { %p1616_p8 = pnand %p1615_p9, %p1609_p5 }
  0x25   : > { %1619 = shalt.err (!%p1616_p8)
}
  0x26   : > { %s1720_s13 = smov [#allocation2]   ;;  %298 = sbr.rel (%p1844_p10) target bundleno = 770 (0x302), region = 52 }
  0x27   : > { %1520 = dma.vmem_to_smem (!%p1518_p0), %s274_s14, 16, %s1720_s13, [#allocation4]  }
  0x2d   : > { %1681 = dma.done.wait (%p1848_p12), [#allocation4], 16  }
  0x2e   : > { %1683 = vsyncadd (%p1848_p12), [#allocation4], 4294967280 }
  0x2f   : > { %304 = sfence }
  0x30   : > { %p337_p11 = scmp.lt.s32.totalorder %s1706_s9, 1  ;;  %p339_p13 = scmp.lt.s32.totalorder %s1702_s30, 1  ;;  %v1721_v0 = vmov 0.0   ;;  %v348_v1 = vld [vmem:[%s2060_s2] sm:$0x3]  ;;  %v1722_v2 = vmov 0   ;;  %v444_v7 = vlaneseq }
  0x31   : > { %429 = vmatprep.mubr.f32.mxu0 %v1721_v0  ;;  %1466 = vmatprep.subr.mxu1 %v1721_v0  ;;  %vm360_vm0 = vcmask 1043456   ;;  %v347_v5 = vld [vmem:[%s2059_s1] sm:$0x3]  ;;  %vm356_vm1 = vcmask 31744   ;;  %p449_p8 = scmp.eq.s32.totalorder %s1702_s30, 0  ;;  %p457_p10 = scmp.eq.s32.totalorder %s1702_s30, 1 }
  0x32   : > { %s338_s22 = scalar_select %p337_p11, %s1706_s9, 1  ;;  %1602 = vset.pattern.permute.xlu0 %v1722_v2  ;;  %1603 = vset.pattern.permute.xlu1 %v1722_v2  ;;  %v1414_v6 = vld [vmem:[%s2063_s5] ss:$0 sm:$0xff]  ;;  %v445_v8 = vand.u32 127, %v444_v7  ;;  %vm1724_vm6 = vmmov 0   ;;  %vm535_vm10 = vcmask 1041408  }
  0x33   : > { %s340_s23 = scalar_select %p339_p13, %s1702_s30, 1  ;;  %351 = vperm.xlu0 %1602, %v348_v1   ;;  %1468 = vmatprep.mubr.msk.f32.mxu1 %vm1724_vm6, %v1721_v0  ;;  %v1416_v23 = vld [vmem:[%s2061_s3 + $0x4] sm:$0xf]  ;;  %vm531_vm12 = vcmask 15360   ;;  %v1415_v25 = vld [vmem:[%s2064_s6] ss:$0 sm:$0xff] }
  0x34   : > { %s1409_s24 = sshll.u32 %s338_s22, 2  ;;  %v446_v10 = vadd.s32 128, %v445_v8  ;;  %vm447_vm2 = vcmp.lt.s32.totalorder %v445_v8, 16  ;;  %s1725_s13 = smov 1   ;;  %vm487_vm13 = vcmask 7168   ;;  %vm477_vm14 = vcmask 1039360  }
  0x35   : > { %s1408_s25 = sshll.u32 %s340_s23, 1  ;;  %s1723_s23 = smov 16   ;;  %v528_v34 = vld [vmem:[%s2061_s3] sm:$0xf]  ;;  %vm481_vm15 = vcmask 252928  }
  0x36   : > { %s343_s26 = sadd.s32 %s1409_s24, %s1408_s25  ;;  %508 = vrot.lane.b32.xlu1 %v1414_v6, %s1723_s23  ;;  %s436_s24 = sld [smem:[#allocation2]]  ;;  %vm456_vm4 = vcmp.ge.s32.totalorder %v446_v10, 144  ;;  %v1421_v39 = vld [vmem:[%s2061_s3 + $0x8] sm:$0xf]  ;;  %v1427_v50 = vld [vmem:[%s2061_s3 + $0x10] sm:$0xf] }
  0x37   : > { %s1410_s14 = sshll.u32 %s343_s26, 2  ;;  %s1726_s17 = smov 127   ;;  %v1271_v54 = vld [vmem:[%s2062_s4] sm:$0xf]  ;;  %v1424_v59 = vld [vmem:[%s2061_s3 + $0xc] sm:$0xf] }
  0x38   : > { %s345_s7 = scalar_lea.vmem %s2058_s0, %s1410_s14  ;;  %s1729_s18 = smov 96   ;;  %v1430_v2 = vld [vmem:[%s2061_s3 + $0x14] sm:$0xf]  ;;  %v1436_v8 = vld [vmem:[%s2061_s3 + $0x1c] sm:$0xf] }
  0x39   : > { %v1880_v3 = vld [vmem:[%s345_s7] sm:$0xff]  ;;  %s450_s25 = scalar_select %p449_p8, 1, 0 }
  0x3a   : > { %v1884_v4 = vcombine.high %v1880_v3, %v1880_v3  ;;  %s458_s26 = scalar_select %p457_p10, 1, 0 }
  0x3b   : > { %v451_v9 = vstv %s450_s25  ;;  %s1727_s7 = smov 32   ;;  %s1442_s22 = sld [smem:[#allocation2 + $0x1]] }
  0x3c   : > { %1411 = vmatprep.subr.msk.mxu0 %vm360_vm0, %v1884_v4  ;;  %v459_v12 = vstv %s458_s26  ;;  %v439_v14 = vstv %s436_s24  ;;  %vm452_vm3 = vcmp.eq.s32.totalorder %v451_v9, 1  ;;  %s1728_s24 = smov 112  }
  0x3d   : > { %1412 = vmatpush1.msk.msra.mxu0 %vm360_vm0, %v1880_v3  ;;  %vm460_vm5 = vcmp.eq.s32.totalorder %v459_v12, 1  ;;  %vm453_vm8 = vmand %vm447_vm2, %vm452_vm3  ;;  %vm771_vm0 = vcmask 916480   ;;  %v1439_v12 = vld [vmem:[%s2061_s3 + $0x20] sm:$0xf] }
  0x3e   : > { %1413 = vmatmul.mubr.msk.f32.vlgmr.msra.gmra.mrb[0].mxu0 %vm356_vm1, %v347_v5  ;;  %1471 = vmatprep.subr.mxu0 %v1721_v0  ;;  %vm462_vm11 = vmand %vm456_vm4, %vm460_vm5  ;;  %vm1025_vm1 = vcmask 785408   ;;  %v1433_v5 = vld [vmem:[%s2061_s3 + $0x18] sm:$0xf] }
  0x3f   : > { %1473 = vmatprep.mubr.msk.f32.mxu0 %vm1724_vm6, %v1721_v0 }
  0xa8   : > { %v509_v26 = vpop.permute.xlu1 %508 }
  0xb2   : > { %v352_v11 = vpop.permute.xlu0 %351 }
 0x111   : > { %v431_v13 = vpop.f32.mrb[0].mxu0 }
 0x112   : > { %v432_v15 = vadd.f32 %v431_v13, %v352_v11  ;;  %v433_v16 = vpop.f32.mrb[1].mxu0 }
 0x113   : > { %v434_v17 = vadd.f32 %v433_v16, %v352_v11 }
 0x114   : > { %vm437_vm7 = vcmp.ge.f32.partialorder %v432_v15, 0.0  ;;  %v440_v18 = vmul.f32 %v439_v14, %v432_v15 }
 0x115   : > { %vm438_vm9 = vcmp.ge.f32.partialorder %v434_v17, 0.0  ;;  %v441_v19 = vmul.f32 %v439_v14, %v434_v17 }
 0x116   : > { %v442_v20 = vsel %vm437_vm7, %v432_v15, %v440_v18 }
 0x117   : > { %v1902_v21 = vsel %vm453_vm8, 0.0, %v442_v20  ;;  %v443_v22 = vsel %vm438_vm9, %v434_v17, %v441_v19 }
 0x118   : > { %483 = vrot.lane.b32.xlu0 %v1902_v21, %s1725_s13  ;;  %1467 = vmatpush3.msk.msra.mxu1 %vm535_vm10, %v1902_v21  ;;  %v470_v24 = vsel %vm462_vm11, 0.0, %v443_v22 }
 0x119   : > { %485 = vrot.lane.b32.xlu1 %v470_v24, %s1725_s13  ;;  %1476 = vmatprep.subr.mxu1 %v1721_v0 }
 0x11a   : > { %1469 = vmatmul.mubr.msk.f32.vlgmr.msra.gmra.mrb[0].mxu1 %vm531_vm12, %v1416_v23 }
 0x11b   : > { %1478 = vmatprep.mubr.msk.f32.mxu1 %vm1724_vm6, %v1721_v0 }
 0x11c   : > { %473 = vrot.lane.b32.xlu0 %v1902_v21, %s1726_s17 }
 0x11d   : > { %475 = vrot.lane.b32.xlu1 %v470_v24, %s1726_s17 }
 0x120   : > { %513 = vrot.lane.b32.xlu0 %v1415_v25, %s1723_s23 }
 0x121   : > { %518 = vrot.lane.b32.xlu1 %v1414_v6, %s1727_s7 }
 0x124   : > { %523 = vrot.lane.b32.xlu0 %v1415_v25, %s1727_s7  ;;  %s334_s7 = sand.u32 1, %s1694_s28  }
 0x125   : > { %851 = vrot.lane.b32.xlu1 %v1902_v21, %s1728_s24  ;;  %s1407_s23 = sshll.u32 %s334_s7, 2 }
 0x126   : > { %s336_s14 = scalar_lea.vmem [#allocation5], %s1407_s23 }
 0x128   : > { %853 = vrot.lane.b32.xlu0 %v470_v24, %s1728_s24 }
 0x18a   : > { %v484_v27 = vpop.permute.xlu0 %483 }
 0x18b   : > { %v491_v28 = vsel %vm487_vm13, 0.0, %v484_v27  ;;  %v486_v29 = vpop.permute.xlu1 %485 }
 0x18c   : > { %v500_v30 = vmul.f32 %v1414_v6, %v491_v28  ;;  %v488_v31 = vsel %vm487_vm13, %v484_v27, %v486_v29  ;;  %v511_v32 = vmul.f32 %v509_v26, %v491_v28 }
 0x18d   : > { %v512_v33 = vmul.f32 %v509_v26, %v488_v31 }
 0x18e   : > { %767 = vrot.lane.b32.xlu1 %v511_v32, %s1728_s24  ;;  %1472 = vmatpush3.msk.msra.mxu0 %vm535_vm10, %v500_v30  ;;  %v474_v35 = vpop.permute.xlu0 %473 }
 0x18f   : > { %v476_v36 = vpop.permute.xlu1 %475  ;;  %769 = vrot.lane.b32.xlu0 %v512_v33, %s1728_s24  ;;  %1481 = vmatprep.subr.mxu0 %v1721_v0 }
 0x190   : > { %v478_v37 = vsel %vm477_vm14, %v474_v35, %v476_v36  ;;  %1474 = vmatmul.mubr.msk.f32.vlgmr.msra.gmra.mrb[2].mxu0 %vm531_vm12, %v528_v34  ;;  %v482_v42 = vsel %vm481_vm15, %v476_v36, 0.0 }
 0x191   : > { %v507_v38 = vmul.f32 %v1415_v25, %v478_v37  ;;  %1483 = vmatprep.mubr.msk.f32.mxu0 %vm1724_vm6, %v1721_v0 }
 0x192   : > { %v514_v40 = vpop.permute.xlu0 %513 }
 0x193   : > { %v519_v41 = vpop.permute.xlu1 %518  ;;  %1107 = vrot.lane.b32.xlu0 %v470_v24, %s1729_s18  ;;  %1477 = vmatpush3.msk.msra.mxu1 %vm535_vm10, %v507_v38  ;;  %v517_v44 = vmul.f32 %v514_v40, %v482_v42  ;;  %v516_v46 = vmul.f32 %v514_v40, %v478_v37  ;;  %v1280_v38 = vstv %s1442_s22  ;;  %s1730_s22 = smov [#allocation5]  }
 0x194   : > { %v521_v43 = vmul.f32 %v519_v41, %v491_v28  ;;  %1486 = vmatprep.subr.mxu1 %v1721_v0  ;;  %1479 = vmatmul.mubr.msk.f32.vlgmr.msra.gmra.mrb[2].mxu1 %vm531_vm12, %v1421_v39  ;;  %v522_v47 = vmul.f32 %v519_v41, %v488_v31  ;;  %s1624_s23 = sshll.u32 %s1730_s22, 4  ;;  %s1625_s23 = int_to_ptr.vmem [resolvable:$false] %s1624_s23 }
 0x195   : > { %1488 = vmatprep.mubr.msk.f32.mxu1 %vm1724_vm6, %v1721_v0 }
 0x196   : > { %1021 = vrot.lane.b32.xlu1 %v521_v43, %s1729_s18  ;;  %v524_v45 = vpop.permute.xlu0 %523 }
 0x197   : > { %938 = vrot.lane.b32.xlu0 %v517_v44, %s1728_s24  ;;  %v852_v48 = vpop.permute.xlu1 %851  ;;  %v527_v52 = vmul.f32 %v524_v45, %v482_v42  ;;  %v526_v53 = vmul.f32 %v524_v45, %v478_v37 }
 0x19a   : > { %936 = vrot.lane.b32.xlu1 %v516_v46, %s1728_s24  ;;  %v854_v49 = vpop.permute.xlu0 %853 }
 0x19b   : > { %v855_v51 = vsel %vm771_vm0, %v852_v48, %v854_v49  ;;  %1023 = vrot.lane.b32.xlu0 %v522_v47, %s1729_s18 }
 0x19c   : > { %1487 = vmatpush3.msk.msra.mxu1 %vm535_vm10, %v855_v51 }
 0x19d   : > { %1496 = vmatprep.subr.mxu1 %v1721_v0  ;;  %1489 = vmatmul.mubr.msk.f32.vlgmr.msra.gmra.mrb[4].mxu1 %vm531_vm12, %v1427_v50 }
 0x19e   : > { %1105 = vrot.lane.b32.xlu1 %v1902_v21, %s1729_s18  ;;  %1498 = vmatprep.mubr.msk.f32.mxu1 %vm1724_vm6, %v1721_v0 }
 0x19f   : > { %1192 = vrot.lane.b32.xlu0 %v527_v52, %s1729_s18 }
 0x1a2   : > { %1190 = vrot.lane.b32.xlu1 %v526_v53, %s1729_s18  ;;  %s1307_s18 = sshll.u32 %s336_s14, 4  ;;  %s2007_s18 = int_to_ptr.vmem [resolvable:$true] %s1307_s18 }
 0x1a3   : > { %1283 = vrot.lane.b32.xlu0 %v1880_v3, %s1728_s24  ;;  %s1620_s21 = scalar_lea.vmem %s2007_s18, 64  ;;  %p1627_p2 = scmp.lt.s32.totalorder %s2007_s18, %s1625_s23 }
 0x1a4   : > { %p1621_p12 = scmp.ne.s32.totalorder %s2007_s18, %s1620_s21 }
 0x1a6   : > { %1274 = vperm.xlu1 %1603, %v1271_v54   ;;  %p1622_p0 = pnand %p1621_p12, %p1828_p3 }
 0x1a8   : > { %p1623_p1 = pneg %p1622_p0 }
 0x1aa   : > { %1285 = vrot.lane.b32.xlu1 %v1884_v4, %s1728_s24  ;;  %s1444_s24 = sshll.u32 %s1706_s9, 1 }
 0x1ab   : > { %s1303_s25 = sadd.s32 %s1702_s30, %s1444_s24  ;;  %s1292_s30 = scalar_lea.sflag [#allocation3], %s334_s7 }
 0x1ac   : > { %s1445_s26 = sshll.u32 %s1303_s25, 6  ;;  %s1626_s24 = scalar_lea.vmem %s1625_s23, 128 }
 0x1ad   : > { %s2005_s17 = scalar_lea.hbm %s2066_s8, %s1445_s26  ;;  %p1628_p4 = scmp.lt.s32.totalorder %s1626_s24, %s1620_s21 }
 0x1af   : > { %p1629_p5 = por %p1628_p4, %p1627_p2 }
 0x1b1   : > { %p1630_p6 = pnand %p1629_p5, %p1623_p1 }
 0x1ed   : > { %v604_v55 = vpop.f32.mrb[0].mxu1 }
 0x1ee   : > { %v1470_v56 = vpop.f32.mrb[1].mxu1 }
 0x200   : > { %v768_v57 = vpop.permute.xlu1 %767 }
 0x201   : > { %v770_v58 = vpop.permute.xlu0 %769 }
 0x202   : > { %v772_v60 = vsel %vm771_vm0, %v768_v57, %v770_v58 }
 0x203   : > { %1482 = vmatpush3.msk.msra.mxu0 %vm535_vm10, %v772_v60 }
 0x204   : > { %1484 = vmatmul.mubr.msk.f32.vlgmr.msra.gmra.mrb[4].mxu0 %vm531_vm12, %v1424_v59  ;;  %1491 = vmatprep.subr.mxu0 %v1721_v0 }
 0x205   : > { %v1108_v61 = vpop.permute.xlu0 %1107  ;;  %1493 = vmatprep.mubr.msk.f32.mxu0 %vm1724_vm6, %v1721_v0 }
 0x208   : > { %v1022_v62 = vpop.permute.xlu1 %1021 }
 0x209   : > { %v939_v63 = vpop.permute.xlu0 %938 }
 0x20c   : > { %v937_v1 = vpop.permute.xlu1 %936 }
 0x20d   : > { %v940_v3 = vsel %vm771_vm0, %v937_v1, %v939_v63  ;;  %v1024_v4 = vpop.permute.xlu0 %1023 }
 0x20e   : > { %v1026_v6 = vsel %vm1025_vm1, %v1022_v62, %v1024_v4  ;;  %1492 = vmatpush3.msk.msra.mxu0 %vm535_vm10, %v940_v3 }
 0x20f   : > { %1497 = vmatpush3.msk.msra.mxu1 %vm535_vm10, %v1026_v6  ;;  %1494 = vmatmul.mubr.msk.f32.vlgmr.msra.gmra.mrb[6].mxu0 %vm531_vm12, %v1430_v2 }
 0x210   : > { %v1106_v7 = vpop.permute.xlu1 %1105  ;;  %1501 = vmatprep.subr.mxu0 %v1721_v0  ;;  %1499 = vmatmul.mubr.msk.f32.vlgmr.msra.gmra.mrb[6].mxu1 %vm531_vm12, %v1433_v5 }
 0x211   : > { %v1109_v9 = vsel %vm1025_vm1, %v1106_v7, %v1108_v61  ;;  %1503 = vmatprep.mubr.msk.f32.mxu0 %vm1724_vm6, %v1721_v0  ;;  %1506 = vmatprep.subr.mxu1 %v1721_v0  ;;  %v1193_v10 = vpop.permute.xlu0 %1192 }
 0x212   : > { %1502 = vmatpush3.msk.msra.mxu0 %vm535_vm10, %v1109_v9  ;;  %1508 = vmatprep.mubr.msk.f32.mxu1 %vm1724_vm6, %v1721_v0 }
 0x213   : > { %1504 = vmatmul.mubr.msk.f32.vlgmr.msra.gmra.mrb[8].mxu0 %vm531_vm12, %v1436_v8 }
 0x214   : > { %v1191_v11 = vpop.permute.xlu1 %1190 }
 0x215   : > { %v1194_v13 = vsel %vm1025_vm1, %v1191_v11, %v1193_v10  ;;  %v1284_v40 = vpop.permute.xlu0 %1283 }
 0x216   : > { %1507 = vmatpush3.msk.msra.mxu1 %vm535_vm10, %v1194_v13 }
 0x217   : > { %1509 = vmatmul.mubr.msk.f32.vlgmr.msra.gmra.mrb[8].mxu1 %vm531_vm12, %v1439_v12 }
 0x225   : > { %v1275_v32 = vpop.permute.xlu1 %1274 }
 0x229   : > { %v1286_v39 = vpop.permute.xlu1 %1285 }
 0x22a   : > { %v1287_v43 = vsel %vm771_vm0, %v1284_v40, %v1286_v39 }
 0x263   : > { %v680_v14 = vpop.f32.mrb[2].mxu0 }
 0x264   : > { %v681_v15 = vadd.f32 %v680_v14, %v604_v55  ;;  %v1475_v16 = vpop.f32.mrb[3].mxu0 }
 0x267   : > { %v758_v17 = vpop.f32.mrb[2].mxu1 }
 0x268   : > { %v762_v18 = vadd.f32 %v758_v17, %v681_v15  ;;  %v1480_v0 = vpop.f32.mrb[3].mxu1 }
 0x270   : > { %v927_v19 = vpop.f32.mrb[4].mxu1 }
 0x271   : > { %v1490_v20 = vpop.f32.mrb[5].mxu1 }
 0x2d7   : > { %v844_v21 = vpop.f32.mrb[4].mxu0 }
 0x2d8   : > { %v848_v22 = vadd.f32 %v844_v21, %v762_v18  ;;  %v1485_v23 = vpop.f32.mrb[5].mxu0 }
 0x2da   : > { %v931_v24 = vadd.f32 %v927_v19, %v848_v22 }
 0x2e2   : > { %v1012_v25 = vpop.f32.mrb[6].mxu0 }
 0x2e3   : > { %v1016_v26 = vadd.f32 %v1012_v25, %v931_v24  ;;  %v1098_v27 = vpop.f32.mrb[6].mxu1  ;;  %v1495_v28 = vpop.f32.mrb[7].mxu0 }
 0x2e4   : > { %v1500_v29 = vpop.f32.mrb[7].mxu1 }
 0x2e5   : > { %v1102_v30 = vadd.f32 %v1098_v27, %v1016_v26 }
 0x2e6   : > { %v1181_v31 = vpop.f32.mrb[8].mxu0 }
 0x2e7   : > { %v1185_v33 = vadd.f32 %v1181_v31, %v1102_v30  ;;  %v1505_v34 = vpop.f32.mrb[9].mxu0 }
 0x2ea   : > { %v1266_v35 = vpop.f32.mrb[8].mxu1 }
 0x2eb   : > { %v1270_v36 = vadd.f32 %v1266_v35, %v1185_v33  ;;  %v1510_v37 = vpop.f32.mrb[9].mxu1 }
 0x2ed   : > { %v1277_v41 = vadd.f32 %v1275_v32, %v1270_v36 }
 0x2ef   : > { %vm1279_vm2 = vcmp.ge.f32.partialorder %v1277_v41, 0.0  ;;  %v1281_v42 = vmul.f32 %v1280_v38, %v1277_v41 }
 0x2f1   : > { %v1282_v44 = vsel %vm1279_vm2, %v1277_v41, %v1281_v42 }
 0x2f2   : > { %v1289_v45 = vadd.f32 %v1287_v43, %v1282_v44 }
 0x2f4   : > { %1290 = vst [vmem:[%s336_s14] sm:$0xf] %v1289_v45 }
 0x2f5   : > { %1633 = shalt.err (!%p1630_p6)
}
 0x2f6   : > { %s1634_s7 = scalar_lea.hbm %s2005_s17, 64  ;;  %s1638_s14 = scalar_lea.hbm %s2066_s8, 256 }
 0x2f7   : > { %p1635_p7 = scmp.ne.s32.totalorder %s2005_s17, %s1634_s7  ;;  %p1639_p13 = scmp.lt.u32.totalorder %s2005_s17, %s2066_s8 }
 0x2f8   : > { %p1640_p8 = scmp.lt.u32.totalorder %s1638_s14, %s1634_s7  ;;  %p1642_p12 = scmp.lt.u32.totalorder %s1634_s7, %s2005_s17 }
 0x2f9   : > { %p1636_p9 = pnand %p1635_p7, %p1828_p3 }
 0x2fa   : > { %p1641_p10 = por %p1640_p8, %p1639_p13 }
 0x2fb   : > { %p1637_p11 = pneg %p1636_p9 }
 0x2fc   : > { %p1643_p0 = por %p1642_p12, %p1641_p10 }
 0x2fe   : > { %p1644_p1 = pnand %p1643_p0, %p1637_p11 }
 0x300   : > { %1647 = shalt.err (!%p1644_p1)
}
 0x301   : > { %1515 = dma.vmem_to_hbm [thread:$0]  (%p1828_p3), %s2007_s18, 64, %s2005_s17, %s1292_s30  }
 0x302 PF: > { %p1527_p2 = scmp.ge.s32.totalorder %s1718_s12, 2  ;;  %s1319_s21 = sand.u32 1, %s1690_s27  }
 0x303   : > { %p2075_p4 = scmp.ne.s32.totalorder %s2071_s20, 0  ;;  %s1320_s22 = scalar_lea.sflag [#allocation3], %s1319_s21 }
 0x305   : > { %p1522_p5 = pnand %p1527_p2, %p2075_p4 }
 0x307   : > { %1685 = dma.done.wait (!%p1522_p5), %s1320_s22, 64  }
 0x308   : > { %1687 = vsyncadd (!%p1522_p5), %s1320_s22, 4294967232  ;;  %s22_s12 = sadd.s32 1, %s1718_s12   ;;  %s2076_s19 = sld [smem:[#allocation8_spill]] }
 0x309   : > { %p19_p6 = scmp.ge.s32.totalorder %s22_s12, 6   ;;  %s2077_s27 = smov %s1694_s28 }
 0x30a   : > { %s2078_s28 = smov %s1698_s29  ;;  %s2079_s29 = smov %s1858_s15 }
 0x30b   : > { %s2080_s30 = smov %s1710_s10  ;;  %s2081_s9 = smov %s1714_s11 }
 0x30c   : > { %s2083_s11 = smov %s2089_s16  ;;  %21 = sbr.rel (!%p19_p6) target bundleno = 8 (0x8), region = 100 }
 0x30e   : > { %s2082_s10 = smov %s2076_s19 }
 0x313   :  { %1325 = vsyncpa [#allocation3], 1 }
 0x314   :  { %1327 = vsyncpa [#allocation3 + $0x1], 1 }
 0x315   :  { %1328 = vsyncpa [#allocation4], 1 }
 0x316   :  { %1330 = vsyncpa [#allocation4 + $0x1], 1 }

</bundles_post_ra>
